<compile_context>
chip_gen: v6e
topology: v6e:2x2x1
jax: 0.10.0
libtpu: 0.0.40
codegen_flags: <defaults>
</compile_context>

<pallas_src>
import functools

import jax
import jax.numpy as jnp
from jax.experimental import pallas as pl
from jax.experimental.pallas import tpu as pltpu

_LANE = 128
_SUBLANE = 8


def _round_up(x, m):
    return ((x + m - 1) // m) * m


@functools.lru_cache(maxsize=1)
def _vmem_budget_bytes():
    """Generation-aware VMEM budget: ~3/4 of physical (one-time query)."""
    try:
        cap = int(pltpu.get_tpu_info().vmem_capacity_bytes)
    except Exception:  # query unavailable (e.g. interpret mode) -> conservative default
        cap = 64 << 20
    return (cap * 3) // 4


def _vmem_cost(bm, in_dim, tn, x_itemsize, w_itemsize, *, resident):
    """Approximate VMEM footprint of the pipelined kernel (double-buffered tiles)."""
    w_bufs = 1 if resident else 2
    return (2 * bm * in_dim * x_itemsize          # x tiles (f32, double-buffered)
            + w_bufs * in_dim * tn * w_itemsize   # weight tile(s)
            + 2 * bm * tn * 4                     # f32 output tiles (double-buffered)
            + 2 * max(tn, _LANE) * 4)             # bias


def fc_kernel(x_ref, w_ref, b_ref, o_ref):
    # Cast x in-kernel (VPU slot has slack) so the wrapper never materializes a
    # bf16 copy of x in HBM.  f32 accumulation on the MXU, bias added in f32.
    x = x_ref[...].astype(w_ref.dtype)
    acc = jnp.dot(x, w_ref[...], preferred_element_type=jnp.float32)
    o_ref[...] = (acc + b_ref[...]).astype(o_ref.dtype)


def prepare_params(w, b, *, compute_dtype=jnp.bfloat16):
    """One-time parameter prep (hoisted out of the per-call path).

    w: [in_dim, num_classes]   (pre-transposed vs. torch's [out, in])
    b: [num_classes]
    Returns (wp, bp): weight cast to `compute_dtype` (lane-padded only if the class
    dim will need 128-lane tiling because the full weight cannot stay VMEM-resident)
    and the bias as f32 [1, Np].
    """
    in_dim, num_classes = w.shape
    w_itemsize = jnp.dtype(compute_dtype).itemsize
    budget = _vmem_budget_bytes()
    needs_tiling = (num_classes % _LANE != 0
                    and in_dim * num_classes * w_itemsize > budget // 4)
    Np = _round_up(num_classes, _LANE) if needs_tiling else num_classes

    wp = w.astype(compute_dtype)
    bp = b.astype(jnp.float32).reshape(1, num_classes)
    if Np != num_classes:
        wp = jnp.pad(wp, ((0, 0), (0, Np - num_classes)))
        bp = jnp.pad(bp, ((0, 0), (0, Np - num_classes)))
    return wp, bp


def single_layer_classifier(x, wp, bp, num_classes=None):
    """Single nn.Linear forward: logits = x @ W + b (f32 accumulation).

    x:  [B, in_dim] float32 (passed through untouched; cast happens in-kernel)
    wp: [in_dim, Np]  pre-cast / pre-padded weight from prepare_params
    bp: [1, Np]       f32 bias from prepare_params
    Returns float32 logits [B, num_classes].
    """
    B, in_dim = x.shape
    Np = wp.shape[1]
    if num_classes is None:
        num_classes = Np
    x_itemsize = jnp.dtype(x.dtype).itemsize
    w_itemsize = jnp.dtype(wp.dtype).itemsize
    budget = _vmem_budget_bytes()

    # --- batch tiling: a single grid step (up to 512 rows) whenever possible -----
    Bp = _round_up(B, _SUBLANE)
    bm = min(512, Bp)
    tn_min = min(Np, _LANE)
    while bm > _SUBLANE and _vmem_cost(bm, in_dim, tn_min, x_itemsize, w_itemsize,
                                       resident=False) > budget:
        bm = max(_SUBLANE, _round_up(bm // 2, _SUBLANE))
    Bp = _round_up(B, bm)
    if Bp != B:  # only materialize a padded x when B is not tile-aligned
        x = jnp.pad(x, ((0, Bp - B), (0, 0)))

    # --- class tiling: keep W fully resident when it fits; else 128-lane tiles ---
    if (_vmem_cost(bm, in_dim, Np, x_itemsize, w_itemsize, resident=True) <= budget
            or Np % _LANE != 0):
        # Small / unpadded heads stay resident; a masked store on a tiny class dim
        # is far cheaper than padding to 128 lanes + an extra slice kernel.
        tn = Np
    else:
        tn = _LANE
        for cand in range(Np, _LANE, -_LANE):
            if Np % cand == 0 and _vmem_cost(bm, in_dim, cand, x_itemsize, w_itemsize,
                                             resident=False) <= budget:
                tn = cand
                break

    n_b, n_n = Bp // bm, Np // tn
    resident_w = (n_n == 1)
    needed = _vmem_cost(bm, in_dim, tn, x_itemsize, w_itemsize, resident=resident_w)
    vmem_limit = int(min(max(needed + needed // 2 + (1 << 20), 4 << 20), budget))

    cost = pl.CostEstimate(
        flops=2 * Bp * in_dim * Np,
        transcendentals=0,
        bytes_accessed=(Bp * in_dim * x_itemsize + in_dim * Np * w_itemsize
                        + Np * 4 + Bp * Np * 4),
    )

    out = pl.pallas_call(
        fc_kernel,
        out_shape=jax.ShapeDtypeStruct((Bp, Np), jnp.float32),
        grid=(n_b, n_n),
        in_specs=[
            pl.BlockSpec((bm, in_dim), lambda i, j: (i, 0)),   # x: batch-tiled, f32
            pl.BlockSpec((in_dim, tn), lambda i, j: (0, j)),   # W: resident or N-tiled
            pl.BlockSpec((1, tn), lambda i, j: (0, j)),        # b
        ],
        out_specs=pl.BlockSpec((bm, tn), lambda i, j: (i, j)),
        compiler_params=pltpu.CompilerParams(
            dimension_semantics=("parallel", "parallel"),
            vmem_limit_bytes=vmem_limit,
        ),
        cost_estimate=cost,
    )(x, wp, bp)

    if out.shape != (B, num_classes):  # slice only when batch/class padding happened
        out = out[:B, :num_classes]
    return out


def init_params(key, in_dim, num_classes, dtype=jnp.float32):
    """Matches SingleLayerClassifier.initialize_weights:
       Linear weight ~ xavier_normal_, Linear bias ~ Uniform[0, 1)."""
    kw, kb = jax.random.split(key)
    std = (2.0 / (in_dim + num_classes)) ** 0.5
    # Stored as [in, out] (transposed vs. torch's [out, in]); xavier is symmetric in fans.
    w = (std * jax.random.normal(kw, (in_dim, num_classes))).astype(dtype)
    b = jax.random.uniform(kb, (num_classes,), dtype=dtype)
    return w, b


if __name__ == "__main__":
    # Small config implied by the module: in_dim features -> num_classes logits.
    batch, in_dim, num_classes = 256, 32, 4

    key = jax.random.PRNGKey(0)
    kx, kp = jax.random.split(key)
    x = jax.random.normal(kx, (batch, in_dim), dtype=jnp.float32)
    w, b = init_params(kp, in_dim, num_classes)

    # One-time parameter prep (cast / optional pad hoisted out of the forward path).
    wp, bp = prepare_params(w, b, compute_dtype=jnp.bfloat16)
    jax.block_until_ready(wp)
    jax.block_until_ready(bp)

    logits = single_layer_classifier(x, wp, bp, num_classes=num_classes)
    logits = jax.block_until_ready(logits)

    # Reference with the same bf16 weights (x cast in-kernel; f32 accumulation).
    x16 = x.astype(jnp.bfloat16).astype(jnp.float32)
    w16 = w.astype(jnp.bfloat16).astype(jnp.float32)
    ref = x16 @ w16 + b.astype(jnp.float32)

    assert logits.shape == (batch, num_classes)
    assert jnp.allclose(logits, ref, atol=1e-2, rtol=1e-2)

    print("KERNEL_OK")
</pallas_src>

<mosaic_0001>
module attributes {stable_mosaic.version = 11 : i64} {
  func.func @fc_kernel(%arg0: i32, %arg1: i32, %arg2: memref<256x32xf32, #tpu.memory_space<vmem>>, %arg3: memref<32x4xbf16, #tpu.memory_space<vmem>>, %arg4: memref<1x4xf32, #tpu.memory_space<vmem>>, %arg5: memref<256x4xf32, #tpu.memory_space<vmem>>) attributes {dimension_semantics = [#tpu.dimension_semantics<parallel>, #tpu.dimension_semantics<parallel>], iteration_bounds = array<i64: 1, 1>, scalar_prefetch = 0 : i64, scratch_operands = 0 : i64, tpu.core_type = #tpu.core_type<tc>, window_params = [{transform_indices = @transform_0, window_bounds = array<i64: 256, 32>}, {transform_indices = @transform_1, window_bounds = array<i64: 32, 4>}, {transform_indices = @transform_2, window_bounds = array<i64: 1, 4>}, {transform_indices = @transform_3, window_bounds = array<i64: 256, 4>}]} {
    %c0 = arith.constant 0 : index
    %c0_0 = arith.constant 0 : index
    %0 = vector.load %arg2[%c0, %c0_0] : memref<256x32xf32, #tpu.memory_space<vmem>>, vector<256x32xf32>
    %1 = arith.truncf %0 : vector<256x32xf32> to vector<256x32xbf16>
    %c0_1 = arith.constant 0 : index
    %c0_2 = arith.constant 0 : index
    %2 = vector.load %arg3[%c0_1, %c0_2] : memref<32x4xbf16, #tpu.memory_space<vmem>>, vector<32x4xbf16>
    %cst = arith.constant dense<0.000000e+00> : vector<256x4xf32>
    %3 = tpu.matmul %1, %2, %cst {dimension_numbers = #tpu.dot_dimension_numbers<[1], [0], [0], [1], [0, 0, 1, 1], [], []>} : vector<256x32xbf16>, vector<32x4xbf16>, vector<256x4xf32> -> vector<256x4xf32>
    %c0_3 = arith.constant 0 : index
    %c0_4 = arith.constant 0 : index
    %4 = vector.load %arg4[%c0_3, %c0_4] : memref<1x4xf32, #tpu.memory_space<vmem>>, vector<1x4xf32>
    %5 = vector.broadcast %4 : vector<1x4xf32> to vector<256x4xf32>
    %6 = arith.addf %3, %5 : vector<256x4xf32>
    %c0_5 = arith.constant 0 : index
    %c0_6 = arith.constant 0 : index
    %7 = vector.load %arg5[%c0_5, %c0_6] : memref<256x4xf32, #tpu.memory_space<vmem>>, vector<256x4xf32>
    tpu.vector_store %arg5[%c0_5, %c0_6], %6 {strides = array<i32>} : memref<256x4xf32, #tpu.memory_space<vmem>>, vector<256x4xf32>,
    return
  }
  func.func @transform_0(%arg0: i32, %arg1: i32) -> (i32, i32) {
    %c0_i32 = arith.constant 0 : i32
    %c0_i32_0 = arith.constant 0 : i32
    return %arg0, %c0_i32 : i32, i32
  }
  func.func @transform_1(%arg0: i32, %arg1: i32) -> (i32, i32) {
    %c0_i32 = arith.constant 0 : i32
    %c0_i32_0 = arith.constant 0 : i32
    return %c0_i32, %arg1 : i32, i32
  }
  func.func @transform_2(%arg0: i32, %arg1: i32) -> (i32, i32) {
    %c0_i32 = arith.constant 0 : i32
    %c0_i32_0 = arith.constant 0 : i32
    return %c0_i32, %arg1 : i32, i32
  }
  func.func @transform_3(%arg0: i32, %arg1: i32) -> (i32, i32) {
    %c0_i32 = arith.constant 0 : i32
    return %arg0, %arg1 : i32, i32
  }
}

</mosaic_0001>

<bundles_post_ra>
// kernel: tpu_custom_call.1
= control target key start
LH: loop header
LB: loop body
LE: loop exit
PB: predicated region body
PF: predicated region fallthrough
CT: control target
= control target key end

     0   :  { %vm86_vm0 = vcmask 261120   ;;  %vm296_vm1 = vcmask 31744   ;;  %s715_s1 = inlined_call_operand.vmem [shape: bf16[32,4], index: 1, kind: input, shape index: {}]   ;;  %s716_s0 = inlined_call_operand.vmem [shape: f32[256,32], index: 0, kind: input, shape index: {}]   ;;  %s717_s2 = inlined_call_operand.vmem [shape: f32[1,4], index: 2, kind: input, shape index: {}]   ;;  %s718_s3 = inlined_call_operand.vmem [shape: f32[256,4], index: 3, kind: output, shape index: {}]  }
   0x1   :  { %v410_v0 = vld [vmem:[%s715_s1 + $0x8] sm:$0xff]   ;;  %v411_v1 = vld [vmem:[%s715_s1] sm:$0xff]   ;;  %v17_v7 = vld [vmem:[%s716_s0 + $0x10] sm:$0xff] }
   0x2   :  { %370 = vmatprep.subr.bf16.mxu0 %v410_v0  ;;  %406 = vmatprep.subr.bf16.mxu1 %v410_v0  ;;  %v15_v2 = vld [vmem:[%s716_s0] sm:$0xff]  ;;  %v16_v3 = vld [vmem:[%s716_s0 + $0x8] sm:$0xff]  ;;  %v18_v8 = vld [vmem:[%s716_s0 + $0x18] sm:$0xff] }
   0x3   :  { %v31_v4 = vld [vmem:[%s716_s0 + $0x80] sm:$0xff]  ;;  %371 = vmatpush3.bf16.msra.mxu0 %v410_v0  ;;  %408 = vmatpush3.bf16.msra.mxu1 %v410_v0  ;;  %v47_v5 = vpack.c.bf16 %v16_v3, %v15_v2  ;;  %v32_v6 = vld [vmem:[%s716_s0 + $0x88] sm:$0xff]  ;;  %v33_v10 = vld [vmem:[%s716_s0 + $0x90] sm:$0xff]  ;;  %v48_v16 = vpack.c.bf16 %v18_v8, %v17_v7 }
   0x4   :  { %372 = vmatprep.subr.bf16.mxu0 %v411_v1  ;;  %407 = vmatprep.subr.bf16.mxu1 %v411_v1  ;;  %v55_v9 = vpack.c.bf16 %v32_v6, %v31_v4  ;;  %v34_v11 = vld [vmem:[%s716_s0 + $0x98] sm:$0xff]  ;;  %v19_v12 = vld [vmem:[%s716_s0 + $0x20] sm:$0xff]  ;;  %v20_v13 = vld [vmem:[%s716_s0 + $0x28] sm:$0xff] }
   0x5   :  { %374 = vmatprep.mubr.msk.bf16.mxu0 %vm86_vm0, %v47_v5  ;;  %v35_v14 = vld [vmem:[%s716_s0 + $0xa0] sm:$0xff]  ;;  %v36_v15 = vld [vmem:[%s716_s0 + $0xa8] sm:$0xff]  ;;  %v56_v17 = vpack.c.bf16 %v34_v11, %v33_v10  ;;  %v49_v18 = vpack.c.bf16 %v20_v13, %v19_v12  ;;  %v21_v20 = vld [vmem:[%s716_s0 + $0x30] sm:$0xff] }
   0x6   :  { %390 = vmatprep.mubr.msk.bf16.mxu1 %vm86_vm0, %v55_v9  ;;  %v57_v19 = vpack.c.bf16 %v36_v15, %v35_v14  ;;  %v22_v21 = vld [vmem:[%s716_s0 + $0x38] sm:$0xff]  ;;  %v37_v22 = vld [vmem:[%s716_s0 + $0xb0] sm:$0xff]  ;;  %v23_v24 = vld [vmem:[%s716_s0 + $0x40] sm:$0xff] }
   0x7   :  { %373 = vmatpush3.bf16.msra.mxu0 %v411_v1  ;;  %409 = vmatpush3.bf16.msra.mxu1 %v411_v1  ;;  %v38_v23 = vld [vmem:[%s716_s0 + $0xb8] sm:$0xff]  ;;  %v24_v25 = vld [vmem:[%s716_s0 + $0x48] sm:$0xff]  ;;  %v39_v26 = vld [vmem:[%s716_s0 + $0xc0] sm:$0xff]  ;;  %v50_v28 = vpack.c.bf16 %v22_v21, %v21_v20 }
   0x8   :  { %v40_v27 = vld [vmem:[%s716_s0 + $0xc8] sm:$0xff]  ;;  %v58_v29 = vpack.c.bf16 %v38_v23, %v37_v22  ;;  %v51_v30 = vpack.c.bf16 %v24_v25, %v23_v24  ;;  %v25_v32 = vld [vmem:[%s716_s0 + $0x50] sm:$0xff]  ;;  %v26_v33 = vld [vmem:[%s716_s0 + $0x58] sm:$0xff] }
   0x9   :  { %v59_v31 = vpack.c.bf16 %v40_v27, %v39_v26  ;;  %v41_v34 = vld [vmem:[%s716_s0 + $0xd0] sm:$0xff]  ;;  %v42_v35 = vld [vmem:[%s716_s0 + $0xd8] sm:$0xff]  ;;  %v27_v36 = vld [vmem:[%s716_s0 + $0x60] sm:$0xff]  ;;  %v52_v40 = vpack.c.bf16 %v26_v33, %v25_v32 }
   0xa   :  { %375 = vmatmul.mubr.msk.bf16.vlgmr.msra.gmra.mxu0 %vm86_vm0, %v48_v16  ;;  %391 = vmatmul.mubr.msk.bf16.vlgmr.msra.gmra.mxu1 %vm86_vm0, %v56_v17  ;;  %v28_v37 = vld [vmem:[%s716_s0 + $0x68] sm:$0xff]  ;;  %v43_v38 = vld [vmem:[%s716_s0 + $0xe0] sm:$0xff]  ;;  %v60_v41 = vpack.c.bf16 %v42_v35, %v41_v34  ;;  %v29_v44 = vld [vmem:[%s716_s0 + $0x70] sm:$0xff] }
   0xb   :  { %378 = vmatprep.mubr.msk.bf16.mxu0 %vm86_vm0, %v49_v18  ;;  %394 = vmatprep.mubr.msk.bf16.mxu1 %vm86_vm0, %v57_v19  ;;  %v44_v39 = vld [vmem:[%s716_s0 + $0xe8] sm:$0xff]  ;;  %v53_v42 = vpack.c.bf16 %v28_v37, %v27_v36  ;;  %v30_v45 = vld [vmem:[%s716_s0 + $0x78] sm:$0xff]  ;;  %v45_v46 = vld [vmem:[%s716_s0 + $0xf0] sm:$0xff] }
   0xc   :  { %v61_v43 = vpack.c.bf16 %v44_v39, %v43_v38  ;;  %v46_v47 = vld [vmem:[%s716_s0 + $0xf8] sm:$0xff]  ;;  %v54_v48 = vpack.c.bf16 %v30_v45, %v29_v44  ;;  %v553_v50 = vld [vmem:[%s717_s2] ss:$0 sm:$0xff] }
   0xd   :  { %v62_v49 = vpack.c.bf16 %v46_v47, %v45_v46 }
  0x12   :  { %379 = vmatmul.mubr.msk.bf16.gmra.mxu0 %vm86_vm0, %v50_v28  ;;  %395 = vmatmul.mubr.msk.bf16.gmra.mxu1 %vm86_vm0, %v58_v29 }
  0x13   :  { %382 = vmatprep.mubr.msk.bf16.mxu0 %vm86_vm0, %v51_v30  ;;  %398 = vmatprep.mubr.msk.bf16.mxu1 %vm86_vm0, %v59_v31 }
  0x1a   :  { %383 = vmatmul.mubr.msk.bf16.gmra.mxu0 %vm86_vm0, %v52_v40  ;;  %399 = vmatmul.mubr.msk.bf16.gmra.mxu1 %vm86_vm0, %v60_v41 }
  0x1b   :  { %386 = vmatprep.mubr.msk.bf16.mxu0 %vm86_vm0, %v53_v42  ;;  %402 = vmatprep.mubr.msk.bf16.mxu1 %vm86_vm0, %v61_v43 }
  0x22   :  { %387 = vmatmul.mubr.msk.bf16.gmra.mxu0 %vm86_vm0, %v54_v48  ;;  %403 = vmatmul.mubr.msk.bf16.gmra.mxu1 %vm86_vm0, %v62_v49 }
  0xca   :  { %v376_v51 = vpop.f32.mrf.mxu0  ;;  %v392_v52 = vpop.f32.mrf.mxu1 }
  0xcb   :  { %v178_v53 = vadd.f32 %v376_v51, %v553_v50  ;;  %v242_v54 = vadd.f32 %v392_v52, %v553_v50 }
  0xcc   :  { %v169_v55 = vpop.f32.mrf.mxu0  ;;  %v233_v56 = vpop.f32.mrf.mxu1 }
  0xcd   :  { %299 = vst.msk [vmem:[%s718_s3 + $0x10] sm:$0xff] %vm296_vm1, %v178_v53  ;;  %315 = vst.msk [vmem:[%s718_s3 + $0x90] sm:$0xff] %vm296_vm1, %v242_v54  ;;  %v170_v57 = vadd.f32 %v553_v50, %v169_v55  ;;  %v234_v58 = vadd.f32 %v553_v50, %v233_v56 }
  0xce   :  { %v377_v59 = vpop.f32.mrf.mxu0  ;;  %v393_v60 = vpop.f32.mrf.mxu1 }
  0xcf   :  { %297 = vst.msk [vmem:[%s718_s3] sm:$0xff] %vm296_vm1, %v170_v57  ;;  %313 = vst.msk [vmem:[%s718_s3 + $0x80] sm:$0xff] %vm296_vm1, %v234_v58  ;;  %v181_v61 = vadd.f32 %v377_v59, %v553_v50  ;;  %v245_v62 = vadd.f32 %v393_v60, %v553_v50 }
  0xd0   :  { %v172_v63 = vpop.f32.mrf.mxu0  ;;  %v236_v0 = vpop.f32.mrf.mxu1 }
  0xd1   :  { %300 = vst.msk [vmem:[%s718_s3 + $0x18] sm:$0xff] %vm296_vm1, %v181_v61  ;;  %316 = vst.msk [vmem:[%s718_s3 + $0x98] sm:$0xff] %vm296_vm1, %v245_v62  ;;  %v173_v1 = vadd.f32 %v553_v50, %v172_v63  ;;  %v237_v2 = vadd.f32 %v553_v50, %v236_v0 }
  0xd2   :  { %v380_v3 = vpop.f32.mrf.mxu0  ;;  %v396_v4 = vpop.f32.mrf.mxu1 }
  0xd3   :  { %298 = vst.msk [vmem:[%s718_s3 + $0x8] sm:$0xff] %vm296_vm1, %v173_v1  ;;  %314 = vst.msk [vmem:[%s718_s3 + $0x88] sm:$0xff] %vm296_vm1, %v237_v2  ;;  %v194_v5 = vadd.f32 %v380_v3, %v553_v50  ;;  %v258_v6 = vadd.f32 %v396_v4, %v553_v50 }
  0xd4   :  { %v185_v7 = vpop.f32.mrf.mxu0  ;;  %v249_v8 = vpop.f32.mrf.mxu1 }
  0xd5   :  { %303 = vst.msk [vmem:[%s718_s3 + $0x30] sm:$0xff] %vm296_vm1, %v194_v5  ;;  %319 = vst.msk [vmem:[%s718_s3 + $0xb0] sm:$0xff] %vm296_vm1, %v258_v6  ;;  %v186_v9 = vadd.f32 %v553_v50, %v185_v7  ;;  %v250_v10 = vadd.f32 %v553_v50, %v249_v8 }
  0xd6   :  { %v381_v11 = vpop.f32.mrf.mxu0  ;;  %v397_v12 = vpop.f32.mrf.mxu1 }
  0xd7   :  { %301 = vst.msk [vmem:[%s718_s3 + $0x20] sm:$0xff] %vm296_vm1, %v186_v9  ;;  %317 = vst.msk [vmem:[%s718_s3 + $0xa0] sm:$0xff] %vm296_vm1, %v250_v10  ;;  %v197_v13 = vadd.f32 %v381_v11, %v553_v50  ;;  %v261_v14 = vadd.f32 %v397_v12, %v553_v50 }
  0xd8   :  { %v188_v15 = vpop.f32.mrf.mxu0  ;;  %v252_v16 = vpop.f32.mrf.mxu1 }
  0xd9   :  { %304 = vst.msk [vmem:[%s718_s3 + $0x38] sm:$0xff] %vm296_vm1, %v197_v13  ;;  %320 = vst.msk [vmem:[%s718_s3 + $0xb8] sm:$0xff] %vm296_vm1, %v261_v14  ;;  %v189_v17 = vadd.f32 %v553_v50, %v188_v15  ;;  %v253_v18 = vadd.f32 %v553_v50, %v252_v16 }
  0xda   :  { %v384_v19 = vpop.f32.mrf.mxu0  ;;  %v400_v20 = vpop.f32.mrf.mxu1 }
  0xdb   :  { %302 = vst.msk [vmem:[%s718_s3 + $0x28] sm:$0xff] %vm296_vm1, %v189_v17  ;;  %318 = vst.msk [vmem:[%s718_s3 + $0xa8] sm:$0xff] %vm296_vm1, %v253_v18  ;;  %v210_v21 = vadd.f32 %v384_v19, %v553_v50  ;;  %v274_v22 = vadd.f32 %v400_v20, %v553_v50 }
  0xdc   :  { %v201_v23 = vpop.f32.mrf.mxu0  ;;  %v265_v24 = vpop.f32.mrf.mxu1 }
  0xdd   :  { %307 = vst.msk [vmem:[%s718_s3 + $0x50] sm:$0xff] %vm296_vm1, %v210_v21  ;;  %323 = vst.msk [vmem:[%s718_s3 + $0xd0] sm:$0xff] %vm296_vm1, %v274_v22  ;;  %v202_v25 = vadd.f32 %v553_v50, %v201_v23  ;;  %v266_v26 = vadd.f32 %v553_v50, %v265_v24 }
  0xde   :  { %v385_v27 = vpop.f32.mrf.mxu0  ;;  %v401_v28 = vpop.f32.mrf.mxu1 }
  0xdf   :  { %305 = vst.msk [vmem:[%s718_s3 + $0x40] sm:$0xff] %vm296_vm1, %v202_v25  ;;  %321 = vst.msk [vmem:[%s718_s3 + $0xc0] sm:$0xff] %vm296_vm1, %v266_v26  ;;  %v213_v29 = vadd.f32 %v385_v27, %v553_v50  ;;  %v277_v30 = vadd.f32 %v401_v28, %v553_v50 }
  0xe0   :  { %v204_v31 = vpop.f32.mrf.mxu0  ;;  %v268_v32 = vpop.f32.mrf.mxu1 }
  0xe1   :  { %308 = vst.msk [vmem:[%s718_s3 + $0x58] sm:$0xff] %vm296_vm1, %v213_v29  ;;  %324 = vst.msk [vmem:[%s718_s3 + $0xd8] sm:$0xff] %vm296_vm1, %v277_v30  ;;  %v205_v33 = vadd.f32 %v553_v50, %v204_v31  ;;  %v269_v34 = vadd.f32 %v553_v50, %v268_v32 }
  0xe2   :  { %v388_v35 = vpop.f32.mrf.mxu0  ;;  %v404_v36 = vpop.f32.mrf.mxu1 }
  0xe3   :  { %306 = vst.msk [vmem:[%s718_s3 + $0x48] sm:$0xff] %vm296_vm1, %v205_v33  ;;  %322 = vst.msk [vmem:[%s718_s3 + $0xc8] sm:$0xff] %vm296_vm1, %v269_v34  ;;  %v226_v37 = vadd.f32 %v388_v35, %v553_v50  ;;  %v290_v38 = vadd.f32 %v404_v36, %v553_v50 }
  0xe4   :  { %v217_v39 = vpop.f32.mrf.mxu0  ;;  %v281_v40 = vpop.f32.mrf.mxu1 }
  0xe5   :  { %311 = vst.msk [vmem:[%s718_s3 + $0x70] sm:$0xff] %vm296_vm1, %v226_v37  ;;  %327 = vst.msk [vmem:[%s718_s3 + $0xf0] sm:$0xff] %vm296_vm1, %v290_v38  ;;  %v218_v41 = vadd.f32 %v553_v50, %v217_v39  ;;  %v282_v42 = vadd.f32 %v553_v50, %v281_v40 }
  0xe6   :  { %v389_v43 = vpop.f32.mrf.mxu0  ;;  %v405_v44 = vpop.f32.mrf.mxu1 }
  0xe7   :  { %309 = vst.msk [vmem:[%s718_s3 + $0x60] sm:$0xff] %vm296_vm1, %v218_v41  ;;  %325 = vst.msk [vmem:[%s718_s3 + $0xe0] sm:$0xff] %vm296_vm1, %v282_v42  ;;  %v229_v45 = vadd.f32 %v389_v43, %v553_v50  ;;  %v293_v46 = vadd.f32 %v405_v44, %v553_v50 }
  0xe8   :  { %v220_v47 = vpop.f32.mrf.mxu0  ;;  %v284_v48 = vpop.f32.mrf.mxu1 }
  0xe9   :  { %312 = vst.msk [vmem:[%s718_s3 + $0x78] sm:$0xff] %vm296_vm1, %v229_v45  ;;  %328 = vst.msk [vmem:[%s718_s3 + $0xf8] sm:$0xff] %vm296_vm1, %v293_v46  ;;  %v221_v49 = vadd.f32 %v553_v50, %v220_v47  ;;  %v285_v51 = vadd.f32 %v553_v50, %v284_v48 }
  0xeb   :  { %310 = vst.msk [vmem:[%s718_s3 + $0x68] sm:$0xff] %vm296_vm1, %v221_v49  ;;  %326 = vst.msk [vmem:[%s718_s3 + $0xe8] sm:$0xff] %vm296_vm1, %v285_v51 }

</bundles_post_ra>
